<compile_context>
chip_gen: v7x
topology: tpu7x:2x2x1
jax: 0.10.0
libtpu: 0.0.40
codegen_flags: <defaults>
</compile_context>

<pallas_src>
import functools

import jax
import jax.numpy as jnp
from jax.experimental import pallas as pl
from jax.experimental.pallas import tpu as pltpu

Q_LEVEL = 6            # matches `q_level = 6` in the reference script
C_MAX = 1.0            # max_value passed to CalculateLoss.__init__

LANES = 128
SUBLANES = 8
MAX_TILE_ROWS = 8192   # (8192, 128) f32 block = 4 MiB per grid step


def _reference_loss(x, q_level=Q_LEVEL, c_max=C_MAX):
    """Pure-JAX literal mirror of the PyTorch forward (also used for the
    unaligned tail and as a fallback for tiny / unsupported-parameter cases)."""
    x = x.astype(jnp.float32)
    safe_zero = x <= 0.0
    safe_one = x >= c_max + 0.5 / q_level
    k = 2.0 * jnp.round(x * q_level - 0.5 - 1e-05) + 1.0
    seq = k * 0.5 / q_level
    small = (x >= 0.0) & (x <= 1.0 / q_level)
    seq = jnp.where(small, 0.0, seq)
    seq = jnp.where(safe_zero, x, seq)
    seq = jnp.where(safe_one, x, seq)
    x_t = jnp.where(small, 0.5 * x, x)
    return jnp.sum(jnp.abs(x_t - seq))


def _num_tensorcores():
    """Best-effort TensorCores-per-chip (v7x: 2). Defaults to 1 on failure."""
    try:
        info = pltpu.get_tpu_info()
    except Exception:
        return 1
    for attr in ("num_cores", "core_count", "num_tensorcores",
                 "num_tensor_cores", "tensorcore_count", "cores_per_chip"):
        v = getattr(info, attr, None)
        try:
            v = int(v)
        except (TypeError, ValueError):
            continue
        if 1 <= v <= 8:
            return v
    return 1


def _loss_kernel(x_ref, o_ref, *, q_level, c_max, valid_rows, steps, need_mask):
    """Streaming elementwise quantization loss; accumulates into the resident
    (8, 128) f32 output block (one per split/core)."""
    i = pl.program_id(1)

    @pl.when(i == 0)
    def _init():
        o_ref[...] = jnp.zeros_like(o_ref)

    x = x_ref[...]
    if x.dtype != jnp.float32:
        x = x.astype(jnp.float32)          # bf16 path: upcast per tile
    tile_rows = x.shape[0]

    inv_q = 1.0 / q_level
    half_step = 0.5 / q_level

    # Folded quantizer: seq = round(x*q - 0.5 - 1e-5)/q + 0.5/q
    # (identical value to k = 2*round(...)+1; seq = k*0.5/q in the reference).
    r = x * q_level - 0.5 - 1e-05
    seq_raw = jnp.round(r) * inv_q + half_step

    small = (x >= 0.0) & (x <= inv_q)
    safe = (x <= 0.0) | (x >= c_max + half_step)

    # Fused |x_t - seq|:  small band -> 0.5*|x|,  main band -> |x - seq_raw|,
    # safe_zero / safe_one -> 0.  (Requires c_max > 0.5/q_level; enforced in
    # the wrapper -- otherwise we fall back to the pure-JAX reference.)
    diff = jnp.where(small, 0.5 * x, x - seq_raw)
    diff = jnp.where(safe, 0.0, jnp.abs(diff))

    def accumulate(v):
        # Free reshape (groups of 8 consecutive rows match the (8,128) native
        # tiling); leading-axis sum lowers to plain vreg adds on the VPU.
        o_ref[...] += v.reshape(-1, SUBLANES, LANES).sum(axis=0)

    if need_mask:
        c = pl.program_id(0)
        tile_start = (c * steps + i) * tile_rows
        full = (tile_start + tile_rows) <= valid_rows

        @pl.when(full)
        def _steady():
            accumulate(diff)

        @pl.when(jnp.logical_not(full))
        def _ragged():
            # Only overflow tiles pay for the iota/compare/select: zero rows
            # past the real array (partial last block / duplicated tiles).
            row = jax.lax.broadcasted_iota(jnp.int32, diff.shape, 0)
            accumulate(jnp.where(tile_start + row < valid_rows, diff, 0.0))
    else:
        accumulate(diff)


def calculate_loss(x, q_level=Q_LEVEL, c_max=C_MAX, *, max_tile_rows=MAX_TILE_ROWS):
    """Pallas implementation of CalculateLoss.forward -> scalar f32 loss."""
    q_level = float(q_level)
    c_max = float(c_max)

    x_flat = jnp.ravel(x)
    if x_flat.dtype not in (jnp.float32, jnp.bfloat16):
        x_flat = x_flat.astype(jnp.float32)
    n = x_flat.shape[0]
    if n == 0:
        return jnp.float32(0.0)

    # The fused safe->0 shortcut requires the safe_one band not to overlap the
    # small band; fall back to the pure-JAX reference otherwise.
    if not (q_level > 0 and c_max > 0.5 / q_level):
        return _reference_loss(x_flat, q_level, c_max)

    granule = 16 if x_flat.dtype == jnp.bfloat16 else SUBLANES
    if n < granule * LANES:
        # Tiny input: a single pure-JAX pass is cheaper than a kernel launch.
        return _reference_loss(x_flat, q_level, c_max)

    # Split off the (<128-element) unaligned tail; no full-array pad copy.
    n_main = (n // LANES) * LANES
    if n_main < n:
        tail = x_flat[n_main:]
        main = x_flat[:n_main]
    else:
        tail = None
        main = x_flat
    rows = n_main // LANES
    x2d = main.reshape(rows, LANES)        # contiguous -> free reshape

    max_rows = max(granule, (int(max_tile_rows) // granule) * granule)
    tile_rows = min(max_rows, (rows // granule) * granule)
    total_tiles = pl.cdiv(rows, tile_rows)

    cores = _num_tensorcores()
    num_splits = min(cores, total_tiles) if cores > 1 else 1
    steps = pl.cdiv(total_tiles, num_splits)
    need_mask = (num_splits * steps * tile_rows) != rows

    kernel = functools.partial(
        _loss_kernel, q_level=q_level, c_max=c_max,
        valid_rows=rows, steps=steps, need_mask=need_mask)

    def x_index_map(c, i):
        t = c * steps + i
        # Clamp tiles past the end (their contribution is masked to zero).
        return (jnp.minimum(t, total_tiles - 1), 0)

    dim0_sem = pltpu.CORE_PARALLEL if num_splits > 1 else pltpu.ARBITRARY

    partials = pl.pallas_call(
        kernel,
        out_shape=jax.ShapeDtypeStruct((num_splits * SUBLANES, LANES), jnp.float32),
        grid_spec=pltpu.PrefetchScalarGridSpec(
            num_scalar_prefetch=0,
            grid=(num_splits, steps),
            in_specs=[pl.BlockSpec((tile_rows, LANES), x_index_map)],
            out_specs=pl.BlockSpec((SUBLANES, LANES), lambda c, i: (c, 0)),
        ),
        compiler_params=pltpu.CompilerParams(
            dimension_semantics=(dim0_sem, pltpu.ARBITRARY)),
    )(x2d)

    loss = jnp.sum(partials)               # tiny (num_splits*8, 128) reduction
    if tail is not None:
        loss = loss + _reference_loss(tail, q_level, c_max)
    return loss


if __name__ == "__main__":
    key = jax.random.PRNGKey(0)
    k1, k2, k3 = jax.random.split(key, 3)

    # 1) Canonical NCHW activation map (aligned, single tile).
    x1 = jax.random.normal(k1, (2, 4, 16, 16), dtype=jnp.float32)
    loss1 = calculate_loss(x1)
    jax.block_until_ready(loss1)
    ref1 = _reference_loss(x1)
    assert jnp.allclose(loss1, ref1, rtol=1e-5, atol=1e-3), (loss1, ref1)

    # 2) Multi-tile + ragged last tile + unaligned tail (128-misaligned size).
    x2 = jax.random.uniform(k2, (4, 6, 17, 19), dtype=jnp.float32) * 1.5
    loss2 = calculate_loss(x2, max_tile_rows=8)
    jax.block_until_ready(loss2)
    ref2 = _reference_loss(x2)
    assert jnp.allclose(loss2, ref2, rtol=1e-5, atol=1e-3), (loss2, ref2)

    # 3) bf16 activations streamed as bf16 and upcast inside the kernel.
    x3 = (jax.random.normal(k3, (2, 8, 16, 16), dtype=jnp.float32)).astype(jnp.bfloat16)
    loss3 = calculate_loss(x3)
    jax.block_until_ready(loss3)
    ref3 = _reference_loss(x3.astype(jnp.float32))
    assert jnp.allclose(loss3, ref3, rtol=1e-5, atol=1e-3), (loss3, ref3)

    # 4) Tiny input exercises the pure-JAX fallback path.
    x4 = jax.random.normal(k1, (3, 5, 7, 3), dtype=jnp.float32)
    loss4 = calculate_loss(x4)
    jax.block_until_ready(loss4)
    assert jnp.allclose(loss4, _reference_loss(x4), rtol=1e-5, atol=1e-4)

    print("KERNEL_OK")
</pallas_src>

<mosaic_0001>
module attributes {stable_mosaic.version = 11 : i64} {
  func.func @_loss_kernel(%arg0: i32, %arg1: i32, %arg2: memref<16x128xf32, #tpu.memory_space<vmem>>, %arg3: memref<8x128xf32, #tpu.memory_space<vmem>>) attributes {dimension_semantics = [#tpu.dimension_semantics<arbitrary>, #tpu.dimension_semantics<arbitrary>], iteration_bounds = array<i64: 1, 1>, scalar_prefetch = 0 : i64, scratch_operands = 0 : i64, tpu.core_type = #tpu.core_type<tc>, window_params = [{transform_indices = @transform_0, window_bounds = array<i64: 16, 128>}, {transform_indices = @transform_1, window_bounds = array<i64: 8, 128>}]} {
    %c0_i32 = arith.constant 0 : i32
    %0 = arith.cmpi eq, %arg1, %c0_i32 : i32
    %1 = arith.extui %0 : i1 to i32
    %c0_i32_0 = arith.constant 0 : i32
    %2 = arith.cmpi ne, %1, %c0_i32_0 : i32
    scf.if %2 {
      %cst_17 = arith.constant 0.000000e+00 : f32
      %37 = vector.broadcast %cst_17 : f32 to vector<8x128xf32>
      %c0_18 = arith.constant 0 : index
      %c0_19 = arith.constant 0 : index
      %38 = vector.load %arg3[%c0_18, %c0_19] : memref<8x128xf32, #tpu.memory_space<vmem>>, vector<8x128xf32>
      tpu.vector_store %arg3[%c0_18, %c0_19], %37 {strides = array<i32>} : memref<8x128xf32, #tpu.memory_space<vmem>>, vector<8x128xf32>,
    } else {
    }
    %c0 = arith.constant 0 : index
    %c0_1 = arith.constant 0 : index
    %3 = vector.load %arg2[%c0, %c0_1] : memref<16x128xf32, #tpu.memory_space<vmem>>, vector<16x128xf32>
    %cst = arith.constant 6.000000e+00 : f32
    %4 = vector.broadcast %cst : f32 to vector<16x128xf32>
    %5 = arith.mulf %3, %4 : vector<16x128xf32>
    %cst_2 = arith.constant 5.000000e-01 : f32
    %6 = vector.broadcast %cst_2 : f32 to vector<16x128xf32>
    %7 = arith.subf %5, %6 : vector<16x128xf32>
    %cst_3 = arith.constant 9.99999974E-6 : f32
    %8 = vector.broadcast %cst_3 : f32 to vector<16x128xf32>
    %9 = arith.subf %7, %8 : vector<16x128xf32>
    %10 = math.roundeven %9 : vector<16x128xf32>
    %cst_4 = arith.constant 0.166666672 : f32
    %11 = vector.broadcast %cst_4 : f32 to vector<16x128xf32>
    %12 = arith.mulf %10, %11 : vector<16x128xf32>
    %cst_5 = arith.constant 0.0833333358 : f32
    %13 = vector.broadcast %cst_5 : f32 to vector<16x128xf32>
    %14 = arith.addf %12, %13 : vector<16x128xf32>
    %cst_6 = arith.constant 0.000000e+00 : f32
    %15 = vector.broadcast %cst_6 : f32 to vector<16x128xf32>
    %16 = arith.cmpf oge, %3, %15 : vector<16x128xf32>
    %cst_7 = arith.constant 0.166666672 : f32
    %17 = vector.broadcast %cst_7 : f32 to vector<16x128xf32>
    %18 = arith.cmpf ole, %3, %17 : vector<16x128xf32>
    %19 = arith.andi %16, %18 : vector<16x128xi1>
    %cst_8 = arith.constant 0.000000e+00 : f32
    %20 = vector.broadcast %cst_8 : f32 to vector<16x128xf32>
    %21 = arith.cmpf ole, %3, %20 : vector<16x128xf32>
    %cst_9 = arith.constant 1.08333337 : f32
    %22 = vector.broadcast %cst_9 : f32 to vector<16x128xf32>
    %23 = arith.cmpf oge, %3, %22 : vector<16x128xf32>
    %24 = arith.ori %21, %23 : vector<16x128xi1>
    %cst_10 = arith.constant 5.000000e-01 : f32
    %25 = vector.broadcast %cst_10 : f32 to vector<16x128xf32>
    %26 = arith.mulf %25, %3 : vector<16x128xf32>
    %27 = arith.subf %3, %14 : vector<16x128xf32>
    %28 = arith.select %19, %26, %27 : vector<16x128xi1>, vector<16x128xf32>
    %29 = math.absf %28 : vector<16x128xf32>
    %cst_11 = arith.constant 0.000000e+00 : f32
    %30 = vector.broadcast %cst_11 : f32 to vector<16x128xf32>
    %31 = arith.select %24, %30, %29 : vector<16x128xi1>, vector<16x128xf32>
    %c0_12 = arith.constant 0 : index
    %c0_13 = arith.constant 0 : index
    %32 = vector.load %arg3[%c0_12, %c0_13] : memref<8x128xf32, #tpu.memory_space<vmem>>, vector<8x128xf32>
    %33 = vector.shape_cast %31 : vector<16x128xf32> to vector<2x8x128xf32>
    %cst_14 = arith.constant dense<0.000000e+00> : vector<8x128xf32>
    %34 = vector.multi_reduction <add>, %33, %cst_14 [0] : vector<2x8x128xf32> to vector<8x128xf32>
    %35 = arith.addf %32, %34 : vector<8x128xf32>
    %c0_15 = arith.constant 0 : index
    %c0_16 = arith.constant 0 : index
    %36 = vector.load %arg3[%c0_15, %c0_16] : memref<8x128xf32, #tpu.memory_space<vmem>>, vector<8x128xf32>
    tpu.vector_store %arg3[%c0_15, %c0_16], %35 {strides = array<i32>} : memref<8x128xf32, #tpu.memory_space<vmem>>, vector<8x128xf32>,
    return
  }
  func.func @transform_0(%arg0: i32, %arg1: i32) -> (i32, i32) {
    %c1_i32 = arith.constant 1 : i32
    %0 = arith.muli %arg0, %c1_i32 : i32
    %1 = arith.addi %0, %arg1 : i32
    %c0_i32 = arith.constant 0 : i32
    %2 = arith.minsi %1, %c0_i32 : i32
    %c0_i32_0 = arith.constant 0 : i32
    %c0_i32_1 = arith.constant 0 : i32
    return %2, %c0_i32_0 : i32, i32
  }
  func.func @transform_1(%arg0: i32, %arg1: i32) -> (i32, i32) {
    %c0_i32 = arith.constant 0 : i32
    %c0_i32_0 = arith.constant 0 : i32
    return %arg0, %c0_i32 : i32, i32
  }
}

</mosaic_0001>

<bundles_post_ra>
// kernel: tpu_custom_call.1
= control target key start
LH: loop header
LB: loop body
LE: loop exit
PB: predicated region body
PF: predicated region fallthrough
CT: control target
= control target key end

     0   :  { %6 = vsyncpa [#allocation3], 0  ;;  %s192_s0 = inlined_call_operand.hbm [shape: f32[16,128], index: 0, kind: input, shape index: {}]   ;;  %s193_s1 = inlined_call_operand.hbm [shape: f32[8,128], index: 1, kind: output, shape index: {}]  }
   0x1   :  { %7 = vsyncpa [#allocation4], 0  ;;  %s154_s6 = smov [#allocation2]   ;;  %s106_s10 = scalar_lea.hbm %s192_s0, 256 }
   0x2   :  { %s19_s7 = sshll.u32 %s154_s6, 4  ;;  %p107_p0 = scmp.ne.s32.totalorder %s192_s0, %s106_s10  ;;  %s20_s7 = int_to_ptr.vmem [resolvable:$true] %s19_s7 }
   0x3   :  { %p110_p1 = scmp.lt.u32.totalorder %s106_s10, %s192_s0 }
   0x5   :  { %p112_p2 = pnand %p110_p1, %p107_p0 }
   0x7   :  { %115 = shalt.err (!%p112_p2)
}
   0x8   :  { %s116_s15 = scalar_lea.vmem %s20_s7, 256  ;;  %p121_p4 = scmp.lt.s32.totalorder %s20_s7, %s20_s7 }
   0x9   :  { %p117_p3 = scmp.ne.s32.totalorder %s20_s7, %s116_s15  ;;  %p122_p5 = scmp.lt.s32.totalorder %s116_s15, %s116_s15 }
   0xb   :  { %p123_p6 = por %p122_p5, %p121_p4 }
   0xd   :  { %p124_p7 = pnand %p123_p6, %p117_p3 }
   0xf   :  { %127 = shalt.err (!%p124_p7)
}
  0x10   :  { %s155_s16 = smov 128   ;;  %s156_s17 = smov 8  }
  0x11   :  { %25 = dma.hbm_to_vmem [thread:$0]  %s192_s0, 256, %s20_s7, [#allocation3], %s155_s16, %s155_s16, %s156_s17  }
  0x12   :  { %150 = dma.done.wait [#allocation3], 256  }
  0x13   :  { %151 = vsyncadd [#allocation3], 4294967040  ;;  %v38_v0 = vld [vmem:[#allocation2] sm:$0xff]  ;;  %v39_v1 = vld [vmem:[#allocation2 + $0x8] sm:$0xff]  ;;  %s157_s0 = smov [#allocation5]  }
  0x14   :  { %v40_v2 = vmul.f32 6.0, %v38_v0  ;;  %v41_v3 = vmul.f32 6.0, %v39_v1  ;;  %vm52_vm0 = vcmp.ge.f32.partialorder %v38_v0, 0.0  ;;  %vm53_vm1 = vcmp.ge.f32.partialorder %v39_v1, 0.0  ;;  %s84_s20 = sshll.u32 %s157_s0, 4  ;;  %s85_s20 = int_to_ptr.vmem [resolvable:$true] %s84_s20 }
  0x15   :  { %vm54_vm2 = vcmp.le.f32.partialorder %v38_v0, 0.16666667  ;;  %vm55_vm3 = vcmp.le.f32.partialorder %v39_v1, 0.16666667  ;;  %vm58_vm4 = vcmp.le.f32.partialorder %v38_v0, 0.0  ;;  %v64_v14 = vmul.f32 0.5, %v38_v0  ;;  %p133_p9 = scmp.lt.s32.totalorder %s85_s20, %s85_s20 }
  0x16   :  { %v95_v4 = vadd.f32 -0.5, %v40_v2  ;;  %v96_v5 = vadd.f32 -0.5, %v41_v3  ;;  %vm60_vm5 = vcmp.ge.f32.partialorder %v38_v0, 1.0833334  ;;  %vm56_vm6 = vmand %vm52_vm0, %vm54_vm2  ;;  %v65_v15 = vmul.f32 0.5, %v39_v1  ;;  %s128_s21 = scalar_lea.vmem %s85_s20, 128 }
  0x17   :  { %vm57_vm7 = vmand %vm53_vm1, %vm55_vm3  ;;  %vm59_vm8 = vcmp.le.f32.partialorder %v39_v1, 0.0  ;;  %vm61_vm9 = vcmp.ge.f32.partialorder %v39_v1, 1.0833334  ;;  %p129_p8 = scmp.ne.s32.totalorder %s85_s20, %s128_s21  ;;  %p134_p10 = scmp.lt.s32.totalorder %s128_s21, %s128_s21 }
  0x18   :  { %v97_v6 = vadd.f32 -1e-05, %v95_v4  ;;  %v98_v7 = vadd.f32 -1e-05, %v96_v5  ;;  %vm62_vm10 = vmor %vm58_vm4, %vm60_vm5 }
  0x19   :  { %vm63_vm11 = vmor %vm59_vm8, %vm61_vm9  ;;  %p135_p11 = por %p134_p10, %p133_p9 }
  0x1a   :  { %v99_v8 = vround.rtne.f32 %v97_v6  ;;  %v100_v9 = vround.rtne.f32 %v98_v7 }
  0x1b   :  { %p136_p12 = pnand %p135_p11, %p129_p8 }
  0x1c   :  { %v48_v10 = vmul.f32 0.16666667, %v99_v8  ;;  %v49_v11 = vmul.f32 0.16666667, %v100_v9 }
  0x1e   :  { %v50_v12 = vadd.f32 0.083333336, %v48_v10  ;;  %v51_v13 = vadd.f32 0.083333336, %v49_v11 }
  0x20   :  { %v66_v16 = vsub.f32 %v38_v0, %v50_v12  ;;  %v67_v17 = vsub.f32 %v39_v1, %v51_v13 }
  0x22   :  { %v68_v18 = vsel %vm56_vm6, %v64_v14, %v66_v16  ;;  %v69_v19 = vsel %vm57_vm7, %v65_v15, %v67_v17 }
  0x23   :  { %v70_v20 = vand.u32 2147483647, %v68_v18  ;;  %v71_v21 = vand.u32 2147483647, %v69_v19 }
  0x25   :  { %v72_v22 = vsel %vm62_vm10, 0.0, %v70_v20  ;;  %v73_v23 = vsel %vm63_vm11, 0.0, %v71_v21 }
  0x26   :  { %v75_v24 = vadd.f32 %v73_v23, %v72_v22 }
  0x28   :  { %77 = vst [vmem:[#allocation5] sm:$0xff] %v75_v24 }
  0x29   :  { %139 = shalt.err (!%p136_p12)
}
  0x2a   :  { %s140_s24 = scalar_lea.hbm %s193_s1, 128 }
  0x2b   :  { %p141_p13 = scmp.ne.s32.totalorder %s193_s1, %s140_s24  ;;  %p144_p0 = scmp.lt.u32.totalorder %s140_s24, %s193_s1 }
  0x2d   :  { %p146_p1 = pnand %p144_p0, %p141_p13 }
  0x2f   :  { %149 = shalt.err (!%p146_p1)
}
  0x30   :  { %87 = dma.vmem_to_hbm [thread:$0]  %s85_s20, 128, %s193_s1, [#allocation4]  }
  0x31   :  { %152 = dma.done.wait [#allocation4], 128  }
  0x32   :  { %153 = vsyncadd [#allocation4], 4294967168 }
  0x33   :  { %91 = vsyncpa [#allocation3], 1 }
  0x34   :  { %92 = vsyncpa [#allocation4], 1 }

</bundles_post_ra>
